<compile_context>
chip_gen: v5e
topology: v5e:2x2
jax: 0.10.0
libtpu: 0.0.40
codegen_flags: <defaults>
</compile_context>

<pallas_src>
import functools

import jax
import jax.numpy as jnp
from jax.experimental import pallas as pl
from jax.experimental.pallas import tpu as pltpu

HID_SIZE = 150  # fixed by the module (self.hid_size = 150)


def _round_up(v, m):
    return (v + m - 1) // m * m


def mlp_kernel(x_ref, w1_ref, b1_ref, w2_ref, b2_ref, o_ref):
    # fc_in: (tile_m, in) @ (in, hid_pad) + b1, then ReLU.
    # Padded hidden columns stay exactly 0 (zero weights + zero bias -> relu(0)=0).
    h = jnp.dot(
        x_ref[...],
        w1_ref[...],
        preferred_element_type=jnp.float32,
        precision=jax.lax.Precision.HIGHEST,
    )
    h = jnp.maximum(h + b1_ref[...], 0.0)
    # fc_out: (tile_m, hid_pad) @ (hid_pad, out) + b2. Padded rows of w2 are 0,
    # so the extra contraction terms are exactly 0. Output is stored unpadded.
    o = jnp.dot(
        h,
        w2_ref[...],
        preferred_element_type=jnp.float32,
        precision=jax.lax.Precision.HIGHEST,
    )
    o_ref[...] = (o + b2_ref[...]).astype(o_ref.dtype)


def prep_params(w1, b1, w2, b2):
    """One-time parameter prep (NOT on the per-forward path).

    Zero-pads the hidden dim 150 -> 256 so both matmuls are lane-aligned.
    w1: (in, hid), b1: (hid,) or (1, hid), w2: (hid, out), b2: (out,) or (1, out).
    """
    in_size, hid = w1.shape
    out_size = w2.shape[1]
    hid_pad = _round_up(hid, 128)
    w1_p = jnp.pad(w1, ((0, 0), (0, hid_pad - hid)))
    b1_p = jnp.pad(jnp.reshape(b1, (1, hid)), ((0, 0), (0, hid_pad - hid)))
    w2_p = jnp.pad(w2, ((0, hid_pad - hid), (0, 0)))
    b2_p = jnp.reshape(b2, (1, out_size))
    return w1_p, b1_p, w2_p, b2_p


@functools.partial(jax.jit, static_argnames=("tile_m",))
def neuralnet_forward(x, w1_p, b1_p, w2_p, b2_p, *, tile_m=1024):
    """x: (N, in_size) f32 -> (N, out_size) f32, matching NeuralNet.forward.

    Takes the pre-padded params from prep_params().
    """
    n, in_size = x.shape
    hid_pad = w1_p.shape[1]
    out_size = w2_p.shape[1]

    # Batch tile: large to amortize per-grid-step overhead; shrink for tiny N;
    # cap at ceil(N/2) (sublane-aligned) so the grid keeps >= 2 steps and both
    # v7x TensorCores stay busy (harmless on 1-TC v5e/v6e).
    tm = min(tile_m, _round_up(pl.cdiv(n, 2), 8))
    grid = (pl.cdiv(n, tm),)  # ragged last block handled by Pallas masking

    return pl.pallas_call(
        mlp_kernel,
        out_shape=jax.ShapeDtypeStruct((n, out_size), jnp.float32),
        grid=grid,
        in_specs=[
            # x: row-tiled along the batch grid axis (unpadded; last block ragged)
            pl.BlockSpec((tm, in_size), lambda i: (i, 0)),
            # weights / biases: constant index_map -> VMEM resident across steps
            pl.BlockSpec((in_size, hid_pad), lambda i: (0, 0)),
            pl.BlockSpec((1, hid_pad), lambda i: (0, 0)),
            pl.BlockSpec((hid_pad, out_size), lambda i: (0, 0)),
            pl.BlockSpec((1, out_size), lambda i: (0, 0)),
        ],
        # Output stored unpadded: only real columns hit HBM, OOB rows dropped.
        out_specs=pl.BlockSpec((tm, out_size), lambda i: (i, 0)),
        compiler_params=pltpu.CompilerParams(
            dimension_semantics=("parallel",),   # shard batch across TCs on v7x
            vmem_limit_bytes=32 * 1024 * 1024,   # tiles + resident weights are tiny
        ),
    )(x, w1_p, b1_p, w2_p, b2_p)


def init_params(key, in_size, out_size):
    """Deterministic init mimicking nn.Linear's default U(-1/sqrt(fan_in), +1/sqrt(fan_in)).

    Stored transposed vs. torch: w1 (in, hid), w2 (hid, out)."""
    k1, k2, k3, k4 = jax.random.split(key, 4)
    bound1 = 1.0 / jnp.sqrt(in_size)
    bound2 = 1.0 / jnp.sqrt(HID_SIZE)
    w1 = jax.random.uniform(k1, (in_size, HID_SIZE), jnp.float32, -bound1, bound1)
    b1 = jax.random.uniform(k2, (1, HID_SIZE), jnp.float32, -bound1, bound1)
    w2 = jax.random.uniform(k3, (HID_SIZE, out_size), jnp.float32, -bound2, bound2)
    b2 = jax.random.uniform(k4, (1, out_size), jnp.float32, -bound2, bound2)
    return w1, b1, w2, b2


def _reference(x, w1, b1, w2, b2):
    h = jnp.maximum(jnp.dot(x, w1, precision=jax.lax.Precision.HIGHEST) + b1, 0.0)
    return jnp.dot(h, w2, precision=jax.lax.Precision.HIGHEST) + b2


if __name__ == "__main__":
    key = jax.random.PRNGKey(0)
    kx, kp, kx2 = jax.random.split(key, 3)

    in_size, out_size = 32, 4
    w1, b1, w2, b2 = init_params(kp, in_size, out_size)
    params = prep_params(w1, b1, w2, b2)  # one-time prep, off the forward path
    jax.block_until_ready(params)

    # Small case (matches the toy module usage): single 8-row tile.
    N = 8
    x = jax.random.normal(kx, (N, in_size), jnp.float32)
    y = neuralnet_forward(x, *params)
    jax.block_until_ready(y)
    y_ref = _reference(x, w1, b1, w2, b2)
    assert y.shape == (N, out_size)
    assert jnp.allclose(y, y_ref, atol=1e-5, rtol=1e-5)

    # Larger batch: 2 grid steps (504-row tiles), ragged last block (1000 % 504 != 0),
    # exercising the unpadded-x / masked-writeback path and v7x 2-TC split.
    N2 = 1000
    x2 = jax.random.normal(kx2, (N2, in_size), jnp.float32)
    y2 = neuralnet_forward(x2, *params)
    jax.block_until_ready(y2)
    y2_ref = _reference(x2, w1, b1, w2, b2)
    assert y2.shape == (N2, out_size)
    assert jnp.allclose(y2, y2_ref, atol=1e-5, rtol=1e-5)

    # TODO(synk): step()/Adam optimizer update and loss_fn are training-time logic,
    # not part of forward(); omitted.
    print("KERNEL_OK")
</pallas_src>

<mosaic_0001>
module attributes {stable_mosaic.version = 11 : i64} {
  func.func @mlp_kernel(%arg0: i32, %arg1: memref<8x32xf32, #tpu.memory_space<vmem>>, %arg2: memref<32x256xf32, #tpu.memory_space<vmem>>, %arg3: memref<1x256xf32, #tpu.memory_space<vmem>>, %arg4: memref<256x4xf32, #tpu.memory_space<vmem>>, %arg5: memref<1x4xf32, #tpu.memory_space<vmem>>, %arg6: memref<8x4xf32, #tpu.memory_space<vmem>>) attributes {dimension_semantics = [#tpu.dimension_semantics<parallel>], iteration_bounds = array<i64: 1>, scalar_prefetch = 0 : i64, scratch_operands = 0 : i64, tpu.core_type = #tpu.core_type<tc>, window_params = [{transform_indices = @transform_0, window_bounds = array<i64: 8, 32>}, {pipeline_mode = #tpu.pipeline_mode<synchronous>, transform_indices = @transform_1, window_bounds = array<i64: 32, 256>}, {pipeline_mode = #tpu.pipeline_mode<synchronous>, transform_indices = @transform_2, window_bounds = array<i64: 1, 256>}, {pipeline_mode = #tpu.pipeline_mode<synchronous>, transform_indices = @transform_3, window_bounds = array<i64: 256, 4>}, {pipeline_mode = #tpu.pipeline_mode<synchronous>, transform_indices = @transform_4, window_bounds = array<i64: 1, 4>}, {transform_indices = @transform_5, window_bounds = array<i64: 8, 4>}]} {
    %c0 = arith.constant 0 : index
    %c0_0 = arith.constant 0 : index
    %0 = vector.load %arg1[%c0, %c0_0] : memref<8x32xf32, #tpu.memory_space<vmem>>, vector<8x32xf32>
    %c0_1 = arith.constant 0 : index
    %c0_2 = arith.constant 0 : index
    %1 = vector.load %arg2[%c0_1, %c0_2] : memref<32x256xf32, #tpu.memory_space<vmem>>, vector<32x256xf32>
    %cst = arith.constant dense<0.000000e+00> : vector<8x256xf32>
    %2 = tpu.matmul %0, %1, %cst {dimension_numbers = #tpu.dot_dimension_numbers<[1], [0], [0], [1], [0, 0, 1, 1], [], []>, precision = #tpu.contract_precision<fp32>} : vector<8x32xf32>, vector<32x256xf32>, vector<8x256xf32> -> vector<8x256xf32>
    %c0_3 = arith.constant 0 : index
    %c0_4 = arith.constant 0 : index
    %3 = vector.load %arg3[%c0_3, %c0_4] : memref<1x256xf32, #tpu.memory_space<vmem>>, vector<1x256xf32>
    %4 = vector.broadcast %3 : vector<1x256xf32> to vector<8x256xf32>
    %5 = arith.addf %2, %4 : vector<8x256xf32>
    %cst_5 = arith.constant 0.000000e+00 : f32
    %6 = vector.broadcast %cst_5 : f32 to vector<8x256xf32>
    %7 = arith.maximumf %5, %6 : vector<8x256xf32>
    %c0_6 = arith.constant 0 : index
    %c0_7 = arith.constant 0 : index
    %8 = vector.load %arg4[%c0_6, %c0_7] : memref<256x4xf32, #tpu.memory_space<vmem>>, vector<256x4xf32>
    %cst_8 = arith.constant dense<0.000000e+00> : vector<8x4xf32>
    %9 = tpu.matmul %7, %8, %cst_8 {dimension_numbers = #tpu.dot_dimension_numbers<[1], [0], [0], [1], [0, 0, 1, 1], [], []>, precision = #tpu.contract_precision<fp32>} : vector<8x256xf32>, vector<256x4xf32>, vector<8x4xf32> -> vector<8x4xf32>
    %c0_9 = arith.constant 0 : index
    %c0_10 = arith.constant 0 : index
    %10 = vector.load %arg5[%c0_9, %c0_10] : memref<1x4xf32, #tpu.memory_space<vmem>>, vector<1x4xf32>
    %11 = vector.broadcast %10 : vector<1x4xf32> to vector<8x4xf32>
    %12 = arith.addf %9, %11 : vector<8x4xf32>
    %c0_11 = arith.constant 0 : index
    %c0_12 = arith.constant 0 : index
    %13 = vector.load %arg6[%c0_11, %c0_12] : memref<8x4xf32, #tpu.memory_space<vmem>>, vector<8x4xf32>
    tpu.vector_store %arg6[%c0_11, %c0_12], %12 {strides = array<i32>} : memref<8x4xf32, #tpu.memory_space<vmem>>, vector<8x4xf32>,
    return
  }
  func.func @transform_0(%arg0: i32) -> (i32, i32) {
    %c0_i32 = arith.constant 0 : i32
    %c0_i32_0 = arith.constant 0 : i32
    return %arg0, %c0_i32 : i32, i32
  }
  func.func @transform_1(%arg0: i32) -> (i32, i32) {
    %c0_i32 = arith.constant 0 : i32
    %c0_i32_0 = arith.constant 0 : i32
    %c0_i32_1 = arith.constant 0 : i32
    return %c0_i32, %c0_i32_0 : i32, i32
  }
  func.func @transform_2(%arg0: i32) -> (i32, i32) {
    %c0_i32 = arith.constant 0 : i32
    %c0_i32_0 = arith.constant 0 : i32
    %c0_i32_1 = arith.constant 0 : i32
    return %c0_i32, %c0_i32_0 : i32, i32
  }
  func.func @transform_3(%arg0: i32) -> (i32, i32) {
    %c0_i32 = arith.constant 0 : i32
    %c0_i32_0 = arith.constant 0 : i32
    %c0_i32_1 = arith.constant 0 : i32
    return %c0_i32, %c0_i32_0 : i32, i32
  }
  func.func @transform_4(%arg0: i32) -> (i32, i32) {
    %c0_i32 = arith.constant 0 : i32
    %c0_i32_0 = arith.constant 0 : i32
    %c0_i32_1 = arith.constant 0 : i32
    return %c0_i32, %c0_i32_0 : i32, i32
  }
  func.func @transform_5(%arg0: i32) -> (i32, i32) {
    %c0_i32 = arith.constant 0 : i32
    %c0_i32_0 = arith.constant 0 : i32
    return %arg0, %c0_i32 : i32, i32
  }
}

</mosaic_0001>

<bundles_post_ra>
// kernel: neuralnet_forward.1
= control target key start
LH: loop header
LB: loop body
LE: loop exit
PB: predicated region body
PF: predicated region fallthrough
CT: control target
= control target key end

     0   :  { %vm35_vm0 = vcmask 261120   ;;  %vm1129_vm1 = vcmask 31744   ;;  %s1888_s1 = inlined_call_operand.vmem [shape: f32[32,256], index: 1, kind: input, shape index: {}]   ;;  %s1889_s0 = inlined_call_operand.vmem [shape: f32[8,32], index: 0, kind: input, shape index: {}]   ;;  %s1890_s3 = inlined_call_operand.vmem [shape: f32[256,4], index: 3, kind: input, shape index: {}]   ;;  %s1891_s2 = inlined_call_operand.vmem [shape: f32[1,256], index: 2, kind: input, shape index: {}]   ;;  %s1892_s4 = inlined_call_operand.vmem [shape: f32[1,4], index: 4, kind: input, shape index: {}]   ;;  %s1893_s5 = inlined_call_operand.vmem [shape: f32[8,4], index: 5, kind: output, shape index: {}]  }
   0x1   :  { %v27_v0 = vld [vmem:[%s1888_s1 + $0x30] sm:$0xff]  ;;  %v25_v1 = vld [vmem:[%s1888_s1 + $0x20] sm:$0xff]  ;;  %v28_v8 = vld [vmem:[%s1888_s1 + $0x38] sm:$0xff] }
   0x2   :  { %v23_v2 = vld [vmem:[%s1888_s1 + $0x10] sm:$0xff]  ;;  %v1175_v3 = vand.u32 4294901760, %v27_v0  ;;  %v1177_v4 = vand.u32 4294901760, %v25_v1  ;;  %v21_v6 = vld [vmem:[%s1888_s1] sm:$0xff]  ;;  %v1192_v11 = vand.u32 4294901760, %v28_v8  ;;  %v26_v12 = vld [vmem:[%s1888_s1 + $0x28] sm:$0xff] }
   0x3   :  { %v1179_v5 = vand.u32 4294901760, %v23_v2  ;;  %v20_v7 = vld [vmem:[%s1889_s0] sm:$0xff]  ;;  %v1190_v9 = vand.u32 4294901760, %v21_v6  ;;  %v24_v13 = vld [vmem:[%s1888_s1 + $0x18] sm:$0xff]  ;;  %v22_v18 = vld [vmem:[%s1888_s1 + $0x8] sm:$0xff]  ;;  %v1215_v20 = vand.u32 4294901760, %v26_v12 }
   0x4   :  { %v37_v10 = vsel %vm35_vm0, %v20_v7, 0  ;;  %v81_v14 = vsub.f32 %v27_v0, %v1175_v3  ;;  %52 = vmatpush.msra.mxu0 %v1175_v3  ;;  %v87_v15 = vsub.f32 %v25_v1, %v1177_v4  ;;  %152 = vmatpush.msra.mxu3 %v1175_v3  ;;  %v1218_v21 = vsub.f32 %v28_v8, %v1192_v11  ;;  %v426_v52 = vld [vmem:[%s1890_s3 + $0x78] sm:$0xff]  ;;  %v425_v54 = vld [vmem:[%s1890_s3 + $0x70] sm:$0xff]  ;;  %v424_v57 = vld [vmem:[%s1890_s3 + $0x68] sm:$0xff] }
   0x5   :  { %v1205_v16 = vsub.f32 %v23_v2, %v1179_v5  ;;  %v1207_v17 = vand.u32 4294901760, %v37_v10  ;;  %v1213_v19 = vsub.f32 %v21_v6, %v1190_v9  ;;  %v1220_v22 = vand.u32 4294901760, %v24_v13  ;;  %v423_v60 = vld [vmem:[%s1890_s3 + $0x60] sm:$0xff]  ;;  %v422_v63 = vld [vmem:[%s1890_s3 + $0x58] sm:$0xff]  ;;  %v420_v7 = vld [vmem:[%s1890_s3 + $0x48] sm:$0xff] }
   0x6   :  { %123 = vmatpush.msra.mxu2 %v81_v14  ;;  %54 = vmatpush.msra.mxu0 %v1177_v4  ;;  %v82_v23 = vand.u32 4294901760, %v81_v14  ;;  %v88_v24 = vand.u32 4294901760, %v87_v15  ;;  %v267_v28 = vand.u32 4294901760, %v1218_v21  ;;  %v1231_v29 = vsub.f32 %v26_v12, %v1215_v20  ;;  %v419_v12 = vld [vmem:[%s1890_s3 + $0x40] sm:$0xff] }
   0x7   :  { %v1224_v25 = vsub.f32 %v37_v10, %v1207_v17  ;;  %v94_v26 = vand.u32 4294901760, %v1205_v16  ;;  %154 = vmatpush.msra.mxu3 %v1177_v4  ;;  %v100_v27 = vand.u32 4294901760, %v1213_v19  ;;  %v1233_v30 = vand.u32 4294901760, %v22_v18 }
   0x8   :  { %126 = vmatpush.msra.mxu2 %v87_v15  ;;  %v83_v31 = vsub.f32 %v81_v14, %v82_v23  ;;  %56 = vmatpush.msra.mxu0 %v1179_v5  ;;  %v89_v32 = vsub.f32 %v87_v15, %v88_v24  ;;  %v268_v35 = vsub.f32 %v1218_v21, %v267_v28  ;;  %v273_v36 = vand.u32 4294901760, %v1231_v29 }
   0x9   :  { %v95_v33 = vsub.f32 %v1205_v16, %v94_v26  ;;  %v1238_v34 = vand.u32 4294901760, %v1224_v25  ;;  %156 = vmatpush.msra.mxu3 %v1179_v5  ;;  %v1246_v37 = vsub.f32 %v24_v13, %v1220_v22  ;;  %v101_v41 = vsub.f32 %v1213_v19, %v100_v27 }
   0xa   :  { %v84_v38 = vand.u32 4294901760, %v83_v31  ;;  %129 = vmatpush.msra.mxu2 %v1205_v16  ;;  %v90_v39 = vand.u32 4294901760, %v89_v32  ;;  %58 = vmatpush.msra.mxu0 %v1190_v9  ;;  %v269_v42 = vand.u32 4294901760, %v268_v35  ;;  %v274_v43 = vsub.f32 %v1231_v29, %v273_v36  ;;  %v418_v16 = vld [vmem:[%s1890_s3 + $0x38] sm:$0xff] }
   0xb   :  { %v62_v40 = vsub.f32 %v1224_v25, %v1238_v34  ;;  %158 = vmatpush.msra.mxu3 %v1190_v9  ;;  %v279_v44 = vand.u32 4294901760, %v1246_v37  ;;  %v96_v45 = vand.u32 4294901760, %v95_v33  ;;  %v1260_v47 = vsub.f32 %v22_v18, %v1233_v30 }
   0xc   :  { %181 = vmatpush.msrb.mxu0 %v82_v23  ;;  %85 = vmatpush.msra.mxu1 %v84_v38  ;;  %v275_v48 = vand.u32 4294901760, %v274_v43  ;;  %v102_v50 = vand.u32 4294901760, %v101_v41  ;;  %v1277_v56 = vand.u32 4294901760, %v426_v52  ;;  %v1284_v59 = vand.u32 4294901760, %v425_v54  ;;  %v417_v23 = vld [vmem:[%s1890_s3 + $0x30] sm:$0xff] }
   0xd   :  { %132 = vmatpush.msra.mxu2 %v1213_v19  ;;  %v63_v46 = vand.u32 4294901760, %v62_v40  ;;  %162 = vmatmul.f32.vlgmr.msra.gmra.mxu3 %v1238_v34  ;;  %v280_v49 = vsub.f32 %v1246_v37, %v279_v44  ;;  %v285_v51 = vand.u32 4294901760, %v1260_v47  ;;  %v1294_v62 = vand.u32 4294901760, %v424_v57 }
   0xe   :  { %135 = vmatmul.f32.vlgmr.msra.gmra.mxu2 %v1224_v25  ;;  %91 = vmatpush.msra.mxu1 %v90_v39  ;;  %v1292_v61 = vsub.f32 %v426_v52, %v1277_v56  ;;  %v1300_v0 = vand.u32 4294901760, %v423_v60  ;;  %v1305_v1 = vsub.f32 %v425_v54, %v1284_v59  ;;  %v1309_v2 = vand.u32 4294901760, %v422_v63  ;;  %v414_v39 = vld [vmem:[%s1890_s3 + $0x18] sm:$0xff]  ;;  %v412_v52 = vld [vmem:[%s1890_s3 + $0x8] sm:$0xff] }
   0xf   :  { %237 = vmatpush.msrb.mxu2 %v1192_v11  ;;  %64 = vmatmul.f32.vlgmr.msra.gmra.mxu0 %v63_v46  ;;  %v286_v53 = vsub.f32 %v1260_v47, %v285_v51  ;;  %v281_v55 = vand.u32 4294901760, %v280_v49  ;;  %v1318_v6 = vsub.f32 %v424_v57, %v1294_v62  ;;  %v1349_v15 = vand.u32 4294901760, %v420_v7 }
  0x10   :  { %270 = vmatpush.msrb.mxu3 %v269_v42  ;;  %97 = vmatpush.msra.mxu1 %v96_v45  ;;  %v496_v8 = vand.u32 4294901760, %v1305_v1  ;;  %v1396_v35 = vand.u32 4294901760, %v417_v23  ;;  %v1441_v49 = vand.u32 4294901760, %v414_v39 }
  0x11   :  { %239 = vmatpush.msrb.mxu2 %v1215_v20  ;;  %185 = vmatpush.msrb.mxu0 %v88_v24  ;;  %v287_v58 = vand.u32 4294901760, %v286_v53  ;;  %v502_v14 = vand.u32 4294901760, %v1318_v6 }
  0x12   :  { %276 = vmatpush.msrb.mxu3 %v275_v48  ;;  %103 = vmatpush.msra.mxu1 %v102_v50  ;;  %v497_v18 = vsub.f32 %v1305_v1, %v496_v8  ;;  %v1426_v43 = vsub.f32 %v417_v23, %v1396_v35 }
  0x13   :  { %241 = vmatpush.msrb.mxu2 %v1220_v22  ;;  %105 = vmatmul.f32.vlgmr.msra.gmra.mxu1 %v1207_v17 }
  0x14   :  { %189 = vmatpush.msrb.mxu0 %v94_v26  ;;  %212 = vmatpush.msrb.mxu1 %v1175_v3  ;;  %v421_v3 = vld [vmem:[%s1890_s3 + $0x50] sm:$0xff]  ;;  %v503_v26 = vsub.f32 %v1318_v6, %v502_v14  ;;  %v498_v31 = vand.u32 4294901760, %v497_v18 }
  0x15   :  { %243 = vmatpush.msrb.mxu2 %v1233_v30  ;;  %282 = vmatpush.msrb.mxu3 %v281_v55  ;;  %v1332_v10 = vand.u32 4294901760, %v421_v3  ;;  %v544_v55 = vand.u32 4294901760, %v1426_v43  ;;  %v441_v18 = vld [vmem:[%s1890_s3 + $0xf0] sm:$0xff] }
  0x16   :  { %193 = vmatpush.msrb.mxu0 %v100_v27  ;;  %214 = vmatpush.msrb.mxu1 %v1177_v4  ;;  %v490_v4 = vand.u32 4294901760, %v1292_v61  ;;  %v1378_v27 = vsub.f32 %v420_v7, %v1349_v15  ;;  %v1472_v7 = vsub.f32 %v414_v39, %v1441_v49  ;;  %v1506_v39 = vand.u32 4294901760, %v441_v18 }
  0x17   :  { %249 = vmatmul.f32.vlgmr.msrb.gmra.mxu2 %v63_v46  ;;  %288 = vmatpush.msrb.mxu3 %v287_v58  ;;  %v1362_v19 = vsub.f32 %v421_v3, %v1332_v10  ;;  %v411_v58 = vld [vmem:[%s1890_s3] sm:$0xff] }
  0x18   :  { %366 = vmatpush.msra.mxu2 %v267_v28  ;;  %216 = vmatpush.msrb.mxu1 %v1179_v5  ;;  %v1324_v5 = vsub.f32 %v423_v60, %v1300_v0  ;;  %v491_v13 = vsub.f32 %v1292_v61, %v490_v4  ;;  %v1380_v28 = vand.u32 4294901760, %v418_v16  ;;  %v442_v60 = vld [vmem:[%s1890_s3 + $0xf8] sm:$0xff] }
  0x19   :  { %195 = vmatmul.f32.vlgmr.msrb.gmra.mxu0 %v1207_v17  ;;  %290 = vmatmul.f32.vlgmr.msrb.gmra.mxu3 %v1207_v17  ;;  %v520_v32 = vand.u32 4294901760, %v1362_v19 }
  0x1a   :  { %308 = vmatpush.msra.mxu0 %v1218_v21  ;;  %218 = vmatpush.msrb.mxu1 %v1190_v9  ;;  %v1337_v9 = vsub.f32 %v422_v63, %v1309_v2  ;;  %v1364_v21 = vand.u32 4294901760, %v419_v12  ;;  %v492_v24 = vand.u32 4294901760, %v491_v13  ;;  %v1411_v38 = vsub.f32 %v418_v16, %v1380_v28 }
  0x1b   :  { %370 = vmatpush.msra.mxu2 %v273_v36  ;;  %397 = vmatpush.msra.mxu3 %v1192_v11  ;;  %v521_v41 = vsub.f32 %v1362_v19, %v520_v32 }
  0x1c   :  { %220 = vmatmul.f32.vlgmr.msrb.gmra.mxu1 %v1207_v17  ;;  %311 = vmatpush.msra.mxu0 %v1231_v29  ;;  %v416_v29 = vld [vmem:[%s1890_s3 + $0x28] sm:$0xff]  ;;  %v1394_v33 = vsub.f32 %v419_v12, %v1364_v21  ;;  %v538_v48 = vand.u32 4294901760, %v1411_v38  ;;  %v1474_v12 = vand.u32 4294901760, %v412_v52 }
  0x1d   :  { %337 = vmatpush.msra.mxu1 %v1192_v11  ;;  %374 = vmatpush.msra.mxu2 %v279_v44  ;;  %v508_v11 = vand.u32 4294901760, %v1324_v5  ;;  %v413_v44 = vld [vmem:[%s1890_s3 + $0x10] sm:$0xff]  ;;  %v522_v53 = vand.u32 4294901760, %v521_v41 }
  0x1e   :  { %399 = vmatpush.msra.mxu3 %v1215_v20  ;;  %314 = vmatpush.msra.mxu0 %v1246_v37  ;;  %v526_v37 = vand.u32 4294901760, %v1378_v27  ;;  %v532_v42 = vand.u32 4294901760, %v1394_v33  ;;  %v539_v3 = vsub.f32 %v1411_v38, %v538_v48 }
  0x1f   :  { %339 = vmatpush.msra.mxu1 %v1215_v20  ;;  %378 = vmatpush.msra.mxu2 %v285_v51  ;;  %v514_v20 = vand.u32 4294901760, %v1337_v9  ;;  %v1448_v51 = vand.u32 4294901760, %v413_v44 }
  0x20   :  { %401 = vmatpush.msra.mxu3 %v1220_v22  ;;  %380 = vmatmul.f32.vlgmr.msra.gmra.mxu2 %v1207_v17  ;;  %v533_v54 = vsub.f32 %v1394_v33, %v532_v42 }
  0x21   :  { %317 = vmatpush.msra.mxu0 %v1260_v47  ;;  %341 = vmatpush.msra.mxu1 %v1220_v22  ;;  %v509_v22 = vsub.f32 %v1324_v5, %v508_v11  ;;  %v515_v36 = vsub.f32 %v1337_v9, %v514_v20  ;;  %v527_v47 = vsub.f32 %v1378_v27, %v526_v37 }
  0x22   :  { %403 = vmatpush.msra.mxu3 %v1233_v30  ;;  %320 = vmatmul.f32.vlgmr.msra.gmra.mxu0 %v1224_v25  ;;  %v1403_v25 = vand.u32 4294901760, %v416_v29  ;;  %v1480_v16 = vsub.f32 %v413_v44, %v1448_v51  ;;  %v534_v23 = vand.u32 4294901760, %v533_v54  ;;  %v439_v44 = vld [vmem:[%s1890_s3 + $0xe0] sm:$0xff] }
  0x23   :  { %405 = vmatmul.f32.vlgmr.msra.gmra.mxu3 %v1207_v17  ;;  %343 = vmatpush.msra.mxu1 %v1233_v30  ;;  %v415_v17 = vld [vmem:[%s1890_s3 + $0x20] sm:$0xff]  ;;  %v504_v30 = vand.u32 4294901760, %v503_v26  ;;  %v510_v40 = vand.u32 4294901760, %v509_v22  ;;  %v516_v46 = vand.u32 4294901760, %v515_v36  ;;  %v528_v63 = vand.u32 4294901760, %v527_v47 }
  0x24   :  { %591 = vmatpush.msrb.mxu2 %v1292_v61  ;;  %347 = vmatmul.f32.vlgmr.msra.gmra.mxu1 %v1238_v34  ;;  %v1415_v34 = vand.u32 4294901760, %v415_v17  ;;  %v1434_v45 = vsub.f32 %v416_v29, %v1403_v25  ;;  %v1489_v26 = vand.u32 4294901760, %v411_v58  ;;  %v1491_v29 = vand.u32 4294901760, %v442_v60 }
  0x25   :  { %644 = vmatpush.msrb.mxu3 %v1277_v56  ;;  %493 = vmatpush.msrb.mxu1 %v492_v24  ;;  %v545_v24 = vsub.f32 %v1426_v43, %v544_v55  ;;  %v1504_v36 = vsub.f32 %v412_v52, %v1474_v12  ;;  %v1896_v41 = vand.u32 4294901760, %v1480_v16 }
  0x26   :  { %594 = vmatpush.msrb.mxu2 %v1305_v1  ;;  %448 = vmatpush.msrb.mxu0 %v1277_v56  ;;  %v1446_v50 = vsub.f32 %v415_v17, %v1415_v34  ;;  %v1897_v57 = vand.u32 4294901760, %v1434_v45  ;;  %v540_v17 = vand.u32 4294901760, %v539_v3  ;;  %v1519_v47 = vsub.f32 %v411_v58, %v1489_v26 }
  0x27   :  { %646 = vmatpush.msrb.mxu3 %v1284_v59  ;;  %499 = vmatpush.msrb.mxu1 %v498_v31  ;;  %v440_v31 = vld [vmem:[%s1890_s3 + $0xe8] sm:$0xff]  ;;  %v1522_v52 = vsub.f32 %v442_v60, %v1491_v29  ;;  %v1898_v60 = vand.u32 4294901760, %v1504_v36  ;;  %v1537_v3 = vsub.f32 %v441_v18, %v1506_v39  ;;  %v1907_v61 = vand.u32 4294901760, %v1434_v45 }
  0x28   :  { %597 = vmatpush.msrb.mxu2 %v1318_v6  ;;  %450 = vmatpush.msrb.mxu0 %v1284_v59  ;;  %v1895_v13 = vand.u32 4294901760, %v1446_v50  ;;  %v551_v22 = vsub.f32 %v1434_v45, %v1897_v57  ;;  %v1910_v1 = vand.u32 4294901760, %v1480_v16  ;;  %v1912_v6 = vand.u32 4294901760, %v1519_v47 }
  0x29   :  { %648 = vmatpush.msrb.mxu3 %v1294_v62  ;;  %505 = vmatpush.msrb.mxu1 %v504_v30  ;;  %v1894_v30 = vand.u32 4294901760, %v1472_v7 }
  0x2a   :  { %600 = vmatpush.msrb.mxu2 %v1324_v5  ;;  %452 = vmatpush.msrb.mxu0 %v1294_v62  ;;  %v552_v54 = vand.u32 4294901760, %v551_v22  ;;  %v569_v22 = vsub.f32 %v1480_v16, %v1896_v41  ;;  %v1901_v41 = vand.u32 4294901760, %v1537_v3 }
  0x2b   :  { %650 = vmatpush.msrb.mxu3 %v1300_v0  ;;  %511 = vmatpush.msrb.mxu1 %v510_v40  ;;  %v557_v40 = vsub.f32 %v1446_v50, %v1895_v13  ;;  %v563_v58 = vsub.f32 %v1472_v7, %v1894_v30  ;;  %v1900_v30 = vand.u32 4294901760, %v1522_v52 }
  0x2c   :  { %603 = vmatpush.msrb.mxu2 %v1337_v9  ;;  %454 = vmatpush.msrb.mxu0 %v1300_v0 }
  0x2d   :  { %652 = vmatpush.msrb.mxu3 %v1309_v2  ;;  %517 = vmatpush.msrb.mxu1 %v516_v46  ;;  %v546_v46 = vand.u32 4294901760, %v545_v24  ;;  %v558_v24 = vand.u32 4294901760, %v557_v40  ;;  %v564_v40 = vand.u32 4294901760, %v563_v58  ;;  %v832_v58 = vsub.f32 %v1522_v52, %v1900_v30 }
  0x2e   :  { %606 = vmatpush.msrb.mxu2 %v1362_v19  ;;  %456 = vmatpush.msrb.mxu0 %v1309_v2 }
  0x2f   :  { %654 = vmatpush.msrb.mxu3 %v1332_v10  ;;  %523 = vmatpush.msrb.mxu1 %v522_v53  ;;  %v1524_v53 = vand.u32 4294901760, %v440_v31  ;;  %v833_v30 = vand.u32 4294901760, %v832_v58 }
  0x30   :  { %609 = vmatpush.msrb.mxu2 %v1378_v27  ;;  %458 = vmatpush.msrb.mxu0 %v1332_v10 }
  0x31   :  { %656 = vmatpush.msrb.mxu3 %v1349_v15  ;;  %529 = vmatpush.msrb.mxu1 %v528_v63  ;;  %v438_v63 = vld [vmem:[%s1890_s3 + $0xd8] sm:$0xff]  ;;  %v1550_v18 = vsub.f32 %v440_v31, %v1524_v53  ;;  %v570_v31 = vand.u32 4294901760, %v569_v22  ;;  %v838_v22 = vsub.f32 %v1537_v3, %v1901_v41 }
  0x32   :  { %612 = vmatpush.msrb.mxu2 %v1394_v33  ;;  %460 = vmatpush.msrb.mxu0 %v1349_v15  ;;  %v1552_v13 = vand.u32 4294901760, %v438_v63 }
  0x33   :  { %658 = vmatpush.msrb.mxu3 %v1364_v21  ;;  %535 = vmatpush.msrb.mxu1 %v534_v23  ;;  %v1539_v23 = vand.u32 4294901760, %v439_v44  ;;  %v839_v41 = vand.u32 4294901760, %v838_v22 }
  0x34   :  { %615 = vmatpush.msrb.mxu2 %v1411_v38  ;;  %462 = vmatpush.msrb.mxu0 %v1364_v21  ;;  %v432_v38 = vld [vmem:[%s1890_s3 + $0xa8] sm:$0xff] }
  0x35   :  { %660 = vmatpush.msrb.mxu3 %v1380_v28  ;;  %541 = vmatpush.msrb.mxu1 %v540_v17  ;;  %v1899_v17 = vand.u32 4294901760, %v1519_v47  ;;  %v1562_v57 = vsub.f32 %v439_v44, %v1539_v23  ;;  %v1575_v44 = vsub.f32 %v438_v63, %v1552_v13 }
  0x36   :  { %618 = vmatpush.msrb.mxu2 %v1426_v43  ;;  %464 = vmatpush.msrb.mxu0 %v1380_v28  ;;  %v1713_v43 = vand.u32 4294901760, %v432_v38 }
  0x37   :  { %662 = vmatpush.msrb.mxu3 %v1396_v35  ;;  %547 = vmatpush.msrb.mxu1 %v546_v46  ;;  %v575_v46 = vsub.f32 %v1504_v36, %v1898_v60  ;;  %v843_v60 = vand.u32 4294901760, %v1550_v18 }
  0x38   :  { %621 = vmatpush.msrb.mxu2 %v1434_v45  ;;  %466 = vmatpush.msrb.mxu0 %v1396_v35 }
  0x39   :  { %664 = vmatpush.msrb.mxu3 %v1403_v25  ;;  %553 = vmatpush.msrb.mxu1 %v552_v54  ;;  %v581_v54 = vsub.f32 %v1519_v47, %v1899_v17  ;;  %v849_v17 = vand.u32 4294901760, %v1562_v57 }
  0x3a   :  { %624 = vmatpush.msrb.mxu2 %v1446_v50  ;;  %468 = vmatpush.msrb.mxu0 %v1403_v25 }
  0x3b   :  { %666 = vmatpush.msrb.mxu3 %v1415_v34  ;;  %559 = vmatpush.msrb.mxu1 %v558_v24  ;;  %v576_v24 = vand.u32 4294901760, %v575_v46  ;;  %v582_v63 = vand.u32 4294901760, %v581_v54  ;;  %v855_v46 = vand.u32 4294901760, %v1575_v44 }
  0x3c   :  { %627 = vmatpush.msrb.mxu2 %v1472_v7  ;;  %470 = vmatpush.msrb.mxu0 %v1415_v34 }
  0x3d   :  { %668 = vmatpush.msrb.mxu3 %v1441_v49  ;;  %565 = vmatpush.msrb.mxu1 %v564_v40  ;;  %v844_v40 = vsub.f32 %v1550_v18, %v843_v60  ;;  %v856_v58 = vsub.f32 %v1575_v44, %v855_v46 }
  0x3e   :  { %630 = vmatpush.msrb.mxu2 %v1480_v16  ;;  %472 = vmatpush.msrb.mxu0 %v1441_v49  ;;  %v430_v16 = vld [vmem:[%s1890_s3 + $0x98] sm:$0xff] }
  0x3f   :  { %670 = vmatpush.msrb.mxu3 %v1448_v51  ;;  %571 = vmatpush.msrb.mxu1 %v570_v31  ;;  %v850_v31 = vsub.f32 %v1562_v57, %v849_v17  ;;  %v845_v54 = vand.u32 4294901760, %v844_v40 }
  0x40   :  { %633 = vmatpush.msrb.mxu2 %v1504_v36  ;;  %474 = vmatpush.msrb.mxu0 %v1448_v51 }
  0x41   :  { %672 = vmatpush.msrb.mxu3 %v1474_v12  ;;  %577 = vmatpush.msrb.mxu1 %v576_v24  ;;  %v851_v24 = vand.u32 4294901760, %v850_v31 }
  0x42   :  { %636 = vmatpush.msrb.mxu2 %v1519_v47  ;;  %476 = vmatpush.msrb.mxu0 %v1474_v12 }
  0x43   :  { %674 = vmatpush.msrb.mxu3 %v1489_v26  ;;  %583 = vmatpush.msrb.mxu1 %v582_v63  ;;  %v429_v63 = vld [vmem:[%s1890_s3 + $0x90] sm:$0xff] }
  0x44   :  { %789 = vmatpush.msra.mxu2 %v1491_v29  ;;  %478 = vmatpush.msrb.mxu0 %v1489_v26 }
  0x45   :  { %834 = vmatpush.msra.mxu3 %v833_v30  ;;  %752 = vmatpush.msra.mxu1 %v1277_v56  ;;  %v857_v30 = vand.u32 4294901760, %v856_v58  ;;  %v437_v56 = vld [vmem:[%s1890_s3 + $0xd0] sm:$0xff]  ;;  %v1753_v58 = vand.u32 4294901760, %v429_v63 }
  0x46   :  { %791 = vmatpush.msra.mxu2 %v1506_v39  ;;  %685 = vmatpush.msra.mxu0 %v490_v4  ;;  %v436_v4 = vld [vmem:[%s1890_s3 + $0xc8] sm:$0xff] }
  0x47   :  { %840 = vmatpush.msra.mxu3 %v839_v41  ;;  %754 = vmatpush.msra.mxu1 %v1284_v59  ;;  %v1619_v59 = vand.u32 4294901760, %v437_v56  ;;  %v1665_v5 = vand.u32 4294901760, %v436_v4  ;;  %v1740_v41 = vand.u32 4294901760, %v430_v16 }
  0x48   :  { %793 = vmatpush.msra.mxu2 %v1524_v53  ;;  %689 = vmatpush.msra.mxu0 %v496_v8 }
  0x49   :  { %846 = vmatpush.msra.mxu3 %v845_v54  ;;  %756 = vmatpush.msra.mxu1 %v1294_v62  ;;  %v1908_v62 = vand.u32 4294901760, %v1446_v50  ;;  %v1668_v8 = vsub.f32 %v437_v56, %v1619_v59 }
  0x4a   :  { %795 = vmatpush.msra.mxu2 %v1539_v23  ;;  %693 = vmatpush.msra.mxu0 %v502_v14 }
  0x4b   :  { %852 = vmatpush.msra.mxu3 %v851_v24  ;;  %758 = vmatpush.msra.mxu1 %v1300_v0  ;;  %v1909_v0 = vand.u32 4294901760, %v1472_v7  ;;  %v861_v9 = vand.u32 4294901760, %v1668_v8  ;;  %v1727_v7 = vsub.f32 %v432_v38, %v1713_v43  ;;  %v1756_v24 = vsub.f32 %v430_v16, %v1740_v41 }
  0x4c   :  { %797 = vmatpush.msra.mxu2 %v1552_v13  ;;  %697 = vmatpush.msra.mxu0 %v508_v11  ;;  %v434_v11 = vld [vmem:[%s1890_s3 + $0xb8] sm:$0xff] }
  0x4d   :  { %858 = vmatpush.msra.mxu3 %v857_v30  ;;  %760 = vmatpush.msra.mxu1 %v1309_v2  ;;  %v1911_v2 = vand.u32 4294901760, %v1504_v36  ;;  %v862_v19 = vsub.f32 %v1668_v8, %v861_v9  ;;  %v891_v36 = vand.u32 4294901760, %v1727_v7  ;;  %v428_v30 = vld [vmem:[%s1890_s3 + $0x88] sm:$0xff] }
  0x4e   :  { %799 = vmatpush.msra.mxu2 %v1619_v59  ;;  %701 = vmatpush.msra.mxu0 %v514_v20  ;;  %v1688_v20 = vand.u32 4294901760, %v434_v11 }
  0x4f   :  { %762 = vmatpush.msra.mxu1 %v1332_v10  ;;  %v435_v10 = vld [vmem:[%s1890_s3 + $0xc0] sm:$0xff]  ;;  %v892_v31 = vsub.f32 %v1727_v7, %v891_v36 }
  0x50   :  { %705 = vmatpush.msra.mxu0 %v520_v32  ;;  %801 = vmatpush.msra.mxu2 %v1665_v5  ;;  %v1675_v14 = vand.u32 4294901760, %v435_v10  ;;  %v863_v32 = vand.u32 4294901760, %v862_v19 }
  0x51   :  { %764 = vmatpush.msra.mxu1 %v1349_v15  ;;  %v1678_v15 = vsub.f32 %v436_v4, %v1665_v5  ;;  %v893_v56 = vand.u32 4294901760, %v892_v31 }
  0x52   :  { %709 = vmatpush.msra.mxu0 %v526_v37  ;;  %803 = vmatpush.msra.mxu2 %v1675_v14  ;;  %v1691_v27 = vsub.f32 %v435_v10, %v1675_v14  ;;  %v1704_v37 = vsub.f32 %v434_v11, %v1688_v20 }
  0x53   :  { %766 = vmatpush.msra.mxu1 %v1364_v21  ;;  %v867_v21 = vand.u32 4294901760, %v1678_v15  ;;  %864 = vmatpush.msra.mxu3 %v863_v32 }
  0x54   :  { %713 = vmatpush.msra.mxu0 %v532_v42  ;;  %805 = vmatpush.msra.mxu2 %v1688_v20 }
  0x55   :  { %768 = vmatpush.msra.mxu1 %v1380_v28  ;;  %v433_v28 = vld [vmem:[%s1890_s3 + $0xb0] sm:$0xff]  ;;  %v868_v33 = vsub.f32 %v1678_v15, %v867_v21 }
  0x56   :  { %717 = vmatpush.msra.mxu0 %v538_v48  ;;  %v879_v48 = vand.u32 4294901760, %v1704_v37 }
  0x57   :  { %770 = vmatpush.msra.mxu1 %v1396_v35  ;;  %v873_v35 = vand.u32 4294901760, %v1691_v27 }
  0x58   :  { %721 = vmatpush.msra.mxu0 %v544_v55 }
  0x59   :  { %772 = vmatpush.msra.mxu1 %v1403_v25  ;;  %v1701_v25 = vand.u32 4294901760, %v433_v28  ;;  %v874_v42 = vsub.f32 %v1691_v27, %v873_v35 }
  0x5a   :  { %725 = vmatpush.msra.mxu0 %v1907_v61 }
  0x5b   :  { %774 = vmatpush.msra.mxu1 %v1415_v34  ;;  %v869_v34 = vand.u32 4294901760, %v868_v33  ;;  %807 = vmatpush.msra.mxu2 %v1701_v25  ;;  %v1716_v45 = vsub.f32 %v433_v28, %v1701_v25  ;;  %v875_v50 = vand.u32 4294901760, %v874_v42 }
  0x5c   :  { %729 = vmatpush.msra.mxu0 %v1908_v62  ;;  %v1765_v62 = vand.u32 4294901760, %v428_v30 }
  0x5d   :  { %776 = vmatpush.msra.mxu1 %v1441_v49  ;;  %v431_v49 = vld [vmem:[%s1890_s3 + $0xa0] sm:$0xff]  ;;  %870 = vmatpush.msra.mxu3 %v869_v34 }
  0x5e   :  { %733 = vmatpush.msra.mxu0 %v1909_v0  ;;  %809 = vmatpush.msra.mxu2 %v1713_v43  ;;  %v1724_v55 = vand.u32 4294901760, %v431_v49  ;;  %v1768_v0 = vsub.f32 %v429_v63, %v1753_v58  ;;  %v1779_v11 = vsub.f32 %v428_v30, %v1765_v62 }
  0x5f   :  { %778 = vmatpush.msra.mxu1 %v1448_v51  ;;  %v885_v51 = vand.u32 4294901760, %v1716_v45  ;;  %876 = vmatpush.msra.mxu3 %v875_v50 }
  0x60   :  { %737 = vmatpush.msra.mxu0 %v1910_v1  ;;  %811 = vmatpush.msra.mxu2 %v1724_v55  ;;  %v1743_v47 = vsub.f32 %v431_v49, %v1724_v55  ;;  %v1905_v1 = vand.u32 4294901760, %v1756_v24  ;;  %v1903_v32 = vand.u32 4294901760, %v1779_v11 }
  0x61   :  { %780 = vmatpush.msra.mxu1 %v1474_v12  ;;  %v880_v12 = vsub.f32 %v1704_v37, %v879_v48 }
  0x62   :  { %741 = vmatpush.msra.mxu0 %v1911_v2  ;;  %813 = vmatpush.msra.mxu2 %v1740_v41  ;;  %v1906_v54 = vand.u32 4294901760, %v1743_v47  ;;  %v427_v2 = vld [vmem:[%s1890_s3 + $0x80] sm:$0xff]  ;;  %v904_v19 = vsub.f32 %v1756_v24, %v1905_v1  ;;  %v916_v42 = vsub.f32 %v1779_v11, %v1903_v32 }
  0x63   :  { %782 = vmatpush.msra.mxu1 %v1489_v26  ;;  %v886_v26 = vsub.f32 %v1716_v45, %v885_v51  ;;  %v881_v22 = vand.u32 4294901760, %v880_v12  ;;  %v1776_v10 = vand.u32 4294901760, %v427_v2 }
  0x64   :  { %745 = vmatpush.msra.mxu0 %v1912_v6  ;;  %v898_v61 = vsub.f32 %v1743_v47, %v1906_v54  ;;  %815 = vmatpush.msra.mxu2 %v1753_v58  ;;  %v1904_v6 = vand.u32 4294901760, %v1768_v0  ;;  %v905_v38 = vand.u32 4294901760, %v904_v19  ;;  %v917_v50 = vand.u32 4294901760, %v916_v42 }
  0x65   :  { %v887_v40 = vand.u32 4294901760, %v886_v26  ;;  %882 = vmatpush.msra.mxu3 %v881_v22  ;;  %v1790_v33 = vsub.f32 %v427_v2, %v1776_v10  ;;  %v29_v26 = vld [vmem:[%s1891_s2] sm:$0x3] }
  0x66   :  { %v899_v4 = vand.u32 4294901760, %v898_v61  ;;  %817 = vmatpush.msra.mxu2 %v1765_v62  ;;  %v910_v28 = vsub.f32 %v1768_v0, %v1904_v6  ;;  %v31_v22 = vperm.slane %v29_v26, 0 }
  0x67   :  { %888 = vmatpush.msra.mxu3 %v887_v40  ;;  %v1902_v49 = vand.u32 4294901760, %v1790_v33 }
  0x68   :  { %819 = vmatpush.msra.mxu2 %v1776_v10  ;;  %v911_v34 = vand.u32 4294901760, %v910_v28  ;;  %v32_v28 = vperm.slane %v29_v26, 1  ;;  %v1913_v26 = vand.u32 4294901760, %v1522_v52 }
  0x69   :  { %894 = vmatpush.msra.mxu3 %v893_v56  ;;  %v922_v12 = vsub.f32 %v1790_v33, %v1902_v49 }
  0x6b   :  { %900 = vmatpush.msra.mxu3 %v899_v4  ;;  %v923_v16 = vand.u32 4294901760, %v922_v12 }
  0x6d   :  { %906 = vmatpush.msra.mxu3 %v905_v38 }
  0x6f   :  { %912 = vmatpush.msra.mxu3 %v911_v34 }
  0x71   :  { %918 = vmatpush.msra.mxu3 %v917_v50 }
  0x73   :  { %924 = vmatpush.msra.mxu3 %v923_v16 }
  0x8c   :  { %v65_v63 = vpop.f32.mrf.mxu0 }
  0x8d   :  { %v66_v40 = vadd.f32 %v65_v63, %v31_v22 }
  0x90   :  { %v106_v31 = vpop.f32.mrf.mxu1  ;;  %v163_v61 = vpop.f32.mrf.mxu3 }
  0x91   :  { %v136_v30 = vpop.f32.mrf.mxu2  ;;  %v107_v56 = vadd.f32 %v106_v31, %v66_v40 }
  0x93   :  { %v137_v2 = vadd.f32 %v136_v30, %v107_v56 }
  0x95   :  { %v164_v4 = vadd.f32 %v163_v61, %v137_v2 }
  0x96   :  { %v196_v19 = vpop.f32.mrf.mxu0 }
  0x97   :  { %v197_v38 = vadd.f32 %v196_v19, %v164_v4 }
  0x99   :  { %v221_v34 = vpop.f32.mrf.mxu1 }
  0x9a   :  { %v222_v42 = vadd.f32 %v221_v34, %v197_v38  ;;  %v250_v50 = vpop.f32.mrf.mxu2 }
  0x9b   :  { %v251_v12 = vadd.f32 %v250_v50, %v32_v28 }
  0x9c   :  { %v409_v16 = vmax.f32 %v222_v42, 0.0  ;;  %v291_v49 = vpop.f32.mrf.mxu3 }
  0x9d   :  { %v292_v6 = vadd.f32 %v291_v49, %v251_v12  ;;  %v1914_v49 = vand.u32 4294901760, %v1537_v3 }
  0x9e   :  { %v479_v32 = vand.u32 4294901760, %v409_v16 }
  0x9f   :  { %v321_v54 = vpop.f32.mrf.mxu0 }
  0xa0   :  { %v480_v1 = vsub.f32 %v409_v16, %v479_v32  ;;  %585 = vmatmul.f32.vlgmr.msrb.gmra.mxu1 %v479_v32  ;;  %v322_v22 = vadd.f32 %v321_v54, %v292_v6 }
  0xa1   :  { %985 = vmatpush.msrb.mxu1 %v1491_v29  ;;  %v348_v40 = vpop.f32.mrf.mxu1 }
  0xa2   :  { %v481_v63 = vand.u32 4294901760, %v480_v1  ;;  %639 = vmatmul.f32.vlgmr.msrb.gmra.mxu2 %v480_v1  ;;  %v349_v31 = vadd.f32 %v348_v40, %v322_v22 }
  0xa3   :  { %987 = vmatpush.msrb.mxu1 %v1506_v39  ;;  %1026 = vmatpush.msrb.mxu2 %v1913_v26  ;;  %v381_v56 = vpop.f32.mrf.mxu2 }
  0xa4   :  { %v482_v30 = vsub.f32 %v480_v1, %v481_v63  ;;  %678 = vmatmul.f32.vlgmr.msrb.gmra.mxu3 %v481_v63  ;;  %v382_v61 = vadd.f32 %v381_v56, %v349_v31 }
  0xa5   :  { %989 = vmatpush.msrb.mxu1 %v1524_v53  ;;  %1030 = vmatpush.msrb.mxu2 %v1914_v49 }
  0xa6   :  { %1093 = vmatpush.msrb.mxu3 %v1491_v29  ;;  %v406_v54 = vpop.f32.mrf.mxu3  ;;  %v483_v6 = vand.u32 4294901760, %v482_v30 }
  0xa7   :  { %v407_v2 = vadd.f32 %v406_v54, %v382_v61  ;;  %991 = vmatpush.msrb.mxu1 %v1539_v23  ;;  %1034 = vmatpush.msrb.mxu2 %v843_v60  ;;  %v1916_v60 = vand.u32 4294901760, %v1756_v24 }
  0xa8   :  { %1095 = vmatpush.msrb.mxu3 %v1506_v39  ;;  %484 = vmatmul.f32.vlgmr.msrb.gmra.mxu0 %v483_v6 }
  0xa9   :  { %v410_v1 = vmax.f32 %v407_v2, 0.0  ;;  %784 = vmatmul.f32.vlgmr.msra.gmra.mxu1 %v479_v32  ;;  %932 = vmatpush.msrb.mxu0 %v1522_v52 }
  0xaa   :  { %993 = vmatpush.msrb.mxu1 %v1552_v13  ;;  %1038 = vmatpush.msrb.mxu2 %v849_v17  ;;  %v1919_v17 = vand.u32 4294901760, %v1790_v33 }
  0xab   :  { %v820_v29 = vand.u32 4294901760, %v410_v1  ;;  %1097 = vmatpush.msrb.mxu3 %v1524_v53  ;;  %935 = vmatpush.msrb.mxu0 %v1537_v3  ;;  %v1917_v3 = vand.u32 4294901760, %v1768_v0 }
  0xac   :  { %995 = vmatpush.msrb.mxu1 %v1619_v59  ;;  %1042 = vmatpush.msrb.mxu2 %v855_v46 }
  0xad   :  { %v821_v39 = vsub.f32 %v410_v1, %v820_v29  ;;  %1099 = vmatpush.msrb.mxu3 %v1539_v23  ;;  %938 = vmatpush.msrb.mxu0 %v1550_v18  ;;  %v1918_v23 = vand.u32 4294901760, %v1779_v11  ;;  %v1135_v18 = vld [vmem:[%s1892_s4] ss:$0 sm:$0xff] }
  0xae   :  { %997 = vmatpush.msrb.mxu1 %v1665_v5  ;;  %1046 = vmatpush.msrb.mxu2 %v861_v9 }
  0xaf   :  { %v822_v52 = vand.u32 4294901760, %v821_v39  ;;  %1101 = vmatpush.msrb.mxu3 %v1552_v13  ;;  %941 = vmatpush.msrb.mxu0 %v1562_v57  ;;  %v1915_v57 = vand.u32 4294901760, %v1743_v47 }
  0xb0   :  { %999 = vmatpush.msrb.mxu1 %v1675_v14  ;;  %1050 = vmatpush.msrb.mxu2 %v867_v21 }
  0xb1   :  { %v823_v53 = vsub.f32 %v821_v39, %v822_v52  ;;  %1103 = vmatpush.msrb.mxu3 %v1619_v59  ;;  %747 = vmatmul.f32.vlgmr.msra.gmra.mxu0 %v479_v32 }
  0xb2   :  { %944 = vmatpush.msrb.mxu0 %v1575_v44  ;;  %1001 = vmatpush.msrb.mxu1 %v1688_v20 }
  0xb3   :  { %1054 = vmatpush.msrb.mxu2 %v873_v35  ;;  %1105 = vmatpush.msrb.mxu3 %v1665_v5  ;;  %v824_v13 = vand.u32 4294901760, %v823_v53 }
  0xb4   :  { %947 = vmatpush.msrb.mxu0 %v1668_v8  ;;  %1003 = vmatpush.msrb.mxu1 %v1701_v25 }
  0xb5   :  { %1058 = vmatpush.msrb.mxu2 %v879_v48  ;;  %1107 = vmatpush.msrb.mxu3 %v1675_v14 }
  0xb6   :  { %825 = vmatmul.f32.vlgmr.msra.gmra.mxu2 %v824_v13  ;;  %950 = vmatpush.msrb.mxu0 %v1678_v15 }
  0xb7   :  { %1005 = vmatpush.msrb.mxu1 %v1713_v43  ;;  %1062 = vmatpush.msrb.mxu2 %v885_v51 }
  0xb8   :  { %1109 = vmatpush.msrb.mxu3 %v1688_v20  ;;  %953 = vmatpush.msrb.mxu0 %v1691_v27 }
  0xb9   :  { %926 = vmatmul.f32.vlgmr.msra.gmra.mxu3 %v820_v29  ;;  %1007 = vmatpush.msrb.mxu1 %v1724_v55 }
  0xba   :  { %1066 = vmatpush.msrb.mxu2 %v891_v36  ;;  %1111 = vmatpush.msrb.mxu3 %v1701_v25 }
  0xbb   :  { %956 = vmatpush.msrb.mxu0 %v1704_v37  ;;  %1009 = vmatpush.msrb.mxu1 %v1740_v41 }
  0xbc   :  { %1070 = vmatpush.msrb.mxu2 %v1915_v57  ;;  %1113 = vmatpush.msrb.mxu3 %v1713_v43 }
  0xbd   :  { %959 = vmatpush.msrb.mxu0 %v1716_v45  ;;  %1011 = vmatpush.msrb.mxu1 %v1753_v58 }
  0xbe   :  { %1074 = vmatpush.msrb.mxu2 %v1916_v60  ;;  %1115 = vmatpush.msrb.mxu3 %v1724_v55 }
  0xbf   :  { %962 = vmatpush.msrb.mxu0 %v1727_v7  ;;  %1013 = vmatpush.msrb.mxu1 %v1765_v62 }
  0xc0   :  { %1078 = vmatpush.msrb.mxu2 %v1917_v3  ;;  %1117 = vmatpush.msrb.mxu3 %v1740_v41 }
  0xc1   :  { %965 = vmatpush.msrb.mxu0 %v1743_v47  ;;  %1015 = vmatpush.msrb.mxu1 %v1776_v10 }
  0xc2   :  { %1082 = vmatpush.msrb.mxu2 %v1918_v23  ;;  %1119 = vmatpush.msrb.mxu3 %v1753_v58 }
  0xc3   :  { %1019 = vmatmul.f32.vlgmr.msrb.gmra.mxu1 %v822_v52  ;;  %968 = vmatpush.msrb.mxu0 %v1756_v24 }
  0xc4   :  { %1086 = vmatpush.msrb.mxu2 %v1919_v17  ;;  %1121 = vmatpush.msrb.mxu3 %v1765_v62 }
  0xc5   :  { %1088 = vmatmul.f32.vlgmr.msrb.gmra.mxu2 %v820_v29  ;;  %971 = vmatpush.msrb.mxu0 %v1768_v0 }
  0xc6   :  { %1123 = vmatpush.msrb.mxu3 %v1776_v10 }
  0xc7   :  { %1125 = vmatmul.f32.vlgmr.msrb.gmra.mxu3 %v820_v29  ;;  %974 = vmatpush.msrb.mxu0 %v1779_v11 }
  0xc9   :  { %977 = vmatpush.msrb.mxu0 %v1790_v33 }
  0xca   :  { %980 = vmatmul.f32.vlgmr.msrb.gmra.mxu0 %v821_v39 }
 0x11d   :  { %v586_v59 = vpop.f32.mrf.mxu1 }
 0x125   :  { %v485_v44 = vpop.f32.mrf.mxu0  ;;  %v640_v8 = vpop.f32.mrf.mxu2 }
 0x126   :  { %v486_v46 = vadd.f32 %v1135_v18, %v485_v44  ;;  %v785_v27 = vpop.f32.mrf.mxu1 }
 0x127   :  { %v679_v14 = vpop.f32.mrf.mxu3 }
 0x128   :  { %v587_v5 = vadd.f32 %v586_v59, %v486_v46 }
 0x12a   :  { %v641_v9 = vadd.f32 %v640_v8, %v587_v5 }
 0x12c   :  { %v680_v15 = vadd.f32 %v679_v14, %v641_v9 }
 0x12e   :  { %v748_v21 = vpop.f32.mrf.mxu0 }
 0x12f   :  { %v749_v20 = vadd.f32 %v748_v21, %v680_v15 }
 0x131   :  { %v786_v25 = vadd.f32 %v785_v27, %v749_v20 }
 0x139   :  { %v826_v35 = vpop.f32.mrf.mxu2 }
 0x13a   :  { %v827_v37 = vadd.f32 %v826_v35, %v786_v25 }
 0x13c   :  { %v927_v43 = vpop.f32.mrf.mxu3 }
 0x13d   :  { %v928_v45 = vadd.f32 %v927_v43, %v827_v37 }
 0x140   :  { %v1020_v55 = vpop.f32.mrf.mxu1 }
 0x147   :  { %v981_v48 = vpop.f32.mrf.mxu0 }
 0x148   :  { %v982_v51 = vadd.f32 %v981_v48, %v928_v45  ;;  %v1089_v36 = vpop.f32.mrf.mxu2 }
 0x14a   :  { %v1021_v7 = vadd.f32 %v1020_v55, %v982_v51  ;;  %v1126_v47 = vpop.f32.mrf.mxu3 }
 0x14c   :  { %v1090_v41 = vadd.f32 %v1089_v36, %v1021_v7 }
 0x14e   :  { %v1127_v58 = vadd.f32 %v1126_v47, %v1090_v41 }
 0x150   :  { %1130 = vst.msk [vmem:[%s1893_s5] sm:$0xff] %vm1129_vm1, %v1127_v58 }

</bundles_post_ra>
